<compile_context>
chip_gen: v7x
topology: tpu7x:2x2x1
jax: 0.10.0
libtpu: 0.0.40
codegen_flags: <defaults>
</compile_context>

<pallas_src>
import math
import functools
import numpy as np
import jax
import jax.numpy as jnp
from jax.experimental import pallas as pl
from jax.experimental.pallas import tpu as pltpu


_SUBLANE = 8  # f32 sublane tile height


# ---------------------------------------------------------------------------
# Dihedral-group regular-representation permutation matrices (identical to the
# PyTorch module's buffer construction).
# ---------------------------------------------------------------------------
def dihedral_permutation_matrix_right(n, a, b):
    P_rot = np.zeros((2 * n, 2 * n), dtype=np.float32)
    for i in range(n):
        P_rot[i, (i + b) % n] = 1.0
        P_rot[i + n, n + (i + b) % n] = 1.0
    P_refl = np.zeros((2 * n, 2 * n), dtype=np.float32)
    for i in range(n):
        P_refl[i, n + (-i) % n] = 1.0
        P_refl[i + n, (-i) % n] = 1.0
    return P_rot if a == 0 else P_rot @ P_refl


# ---------------------------------------------------------------------------
# Pallas kernel: single invocation, whole problem resident in VMEM.
# ---------------------------------------------------------------------------
def _group_conv_kernel(x_ref, wt_ref, p_ref, o_ref):
    """x_ref : (B, Cin, 2n)      input activations
       wt_ref: (G, Coutp, Cin)   weights (pre-transposed, Cout zero-padded to 8)
       p_ref : (G, 2n, 2n)       regular-rep permutation matrices
       o_ref : (B, Coutp, 2n)    output (lane-dense 2n, full (8,128) stores)
    """
    B = x_ref.shape[0]
    G = wt_ref.shape[0]
    coutp = o_ref.shape[1]
    two_n = o_ref.shape[2]

    # B and G are tiny (2 and 3): static unroll gives the LLO scheduler full
    # visibility; every dot is a plain 2D MXU matmul.
    for b in range(B):
        xb = x_ref[b]                                     # (Cin, 2n)
        acc = jnp.zeros((coutp, two_n), jnp.float32)
        for g in range(G):
            # channel mix:  a[d, i]   = sum_c w[g, c, d] * x[b, c, i]
            a = jnp.dot(wt_ref[g], xb, preferred_element_type=jnp.float32)
            # group perm:   acc[d, o] += sum_i a[d, i] * perm[g, i, o]
            acc = acc + jnp.dot(a, p_ref[g],
                                preferred_element_type=jnp.float32)
        o_ref[b] = acc.astype(o_ref.dtype)


# ---------------------------------------------------------------------------
# One-time (init-time) parameter prep: host-side numpy, outside the per-call
# jitted path.  (G, Cin, Cout) -> (G, Coutp, Cin), Coutp = Cout rounded up to
# a multiple of 8 so the kernel's output tiles are full vregs.
# ---------------------------------------------------------------------------
def prepare_weight(weight):
    w = np.asarray(weight, dtype=np.float32)
    G, cin, cout = w.shape
    coutp = ((cout + _SUBLANE - 1) // _SUBLANE) * _SUBLANE
    wt = np.zeros((G, coutp, cin), dtype=np.float32)
    wt[:, :cout, :] = np.transpose(w, (0, 2, 1))
    return jnp.asarray(wt)


# ---------------------------------------------------------------------------
# Forward pass (semantics of DihedralGroupConv.forward).
# ---------------------------------------------------------------------------
def dihedral_group_conv_forward(x, wt, perm, *, out_channels):
    """x: (B, Cin, 2n); wt: (G, Coutp, Cin) from prepare_weight;
    perm: (G, 2n, 2n).  Returns (B, out_channels, 2n)."""
    B, _, two_n = x.shape
    coutp = wt.shape[1]
    out = pl.pallas_call(
        _group_conv_kernel,
        out_shape=jax.ShapeDtypeStruct((B, coutp, two_n), x.dtype),
        in_specs=[
            pl.BlockSpec(memory_space=pltpu.MemorySpace.VMEM),
            pl.BlockSpec(memory_space=pltpu.MemorySpace.VMEM),
            pl.BlockSpec(memory_space=pltpu.MemorySpace.VMEM),
        ],
        out_specs=pl.BlockSpec(memory_space=pltpu.MemorySpace.VMEM),
    )(x, wt, perm)
    # NOTE: the PyTorch module allocates a bias parameter but never adds it in
    # forward(), so no bias is applied here either.
    return out[:, :out_channels, :]


if __name__ == "__main__":
    # Small, TPU-friendly sizes consistent with the module
    # (regular-representation dimension 2n = 128 -> one full lane tile).
    n = 64
    in_channels = 4
    out_channels = 4
    batch = 2
    generators = [(0, 1), (1, 0), (1, 3)]

    perm = jnp.asarray(np.stack(
        [dihedral_permutation_matrix_right(n, a, b) for a, b in generators]))

    key = jax.random.PRNGKey(0)
    kw, kx = jax.random.split(key)
    # Deterministic kaiming-uniform-style init for weight (G, Cin, Cout).
    fan_in = in_channels * out_channels
    gain = math.sqrt(2.0 / (1.0 + 2.0))      # a = sqrt(2)
    bound = gain * math.sqrt(3.0 / fan_in)
    weight = jax.random.uniform(
        kw, (len(generators), in_channels, out_channels),
        minval=-bound, maxval=bound, dtype=jnp.float32)

    x = jax.random.normal(kx, (batch, in_channels, 2 * n), dtype=jnp.float32)

    # Init-time prep (hoisted out of the per-call path).
    wt = prepare_weight(weight)

    fwd = jax.jit(functools.partial(dihedral_group_conv_forward,
                                    out_channels=out_channels))
    y = jax.block_until_ready(fwd(x, wt, perm))

    # Plain-JAX reference following the original dense PyTorch formulation.
    filt_ref = jnp.einsum('gio,gcd->cido', perm, weight).reshape(
        2 * n * in_channels, 2 * n * out_channels)
    y_ref = (x.reshape(batch, -1) @ filt_ref).reshape(
        batch, out_channels, 2 * n)

    assert y.shape == (batch, out_channels, 2 * n)
    assert y.dtype == jnp.float32
    np.testing.assert_allclose(np.asarray(y), np.asarray(y_ref),
                               rtol=1e-5, atol=1e-5)

    print("KERNEL_OK")
</pallas_src>

<mosaic_0001>
module attributes {stable_mosaic.version = 11 : i64} {
  func.func @_group_conv_kernel(%arg0: memref<2x4x128xf32, #tpu.memory_space<vmem>>, %arg1: memref<3x8x4xf32, #tpu.memory_space<vmem>>, %arg2: memref<3x128x128xf32, #tpu.memory_space<vmem>>, %arg3: memref<2x8x128xf32, #tpu.memory_space<vmem>>) attributes {dimension_semantics = [], scalar_prefetch = 0 : i64, scratch_operands = 0 : i64, tpu.core_type = #tpu.core_type<tc>} {
    %c0 = arith.constant 0 : index
    %c0_0 = arith.constant 0 : index
    %c0_1 = arith.constant 0 : index
    %0 = vector.load %arg0[%c0, %c0_0, %c0_1] : memref<2x4x128xf32, #tpu.memory_space<vmem>>, vector<1x4x128xf32>
    %1 = vector.shape_cast %0 : vector<1x4x128xf32> to vector<4x128xf32>
    %cst = arith.constant 0.000000e+00 : f32
    %2 = vector.broadcast %cst : f32 to vector<8x128xf32>
    %c0_2 = arith.constant 0 : index
    %c0_3 = arith.constant 0 : index
    %c0_4 = arith.constant 0 : index
    %3 = vector.load %arg1[%c0_2, %c0_3, %c0_4] : memref<3x8x4xf32, #tpu.memory_space<vmem>>, vector<1x8x4xf32>
    %4 = vector.shape_cast %3 : vector<1x8x4xf32> to vector<8x4xf32>
    %cst_5 = arith.constant dense<0.000000e+00> : vector<8x128xf32>
    %5 = tpu.matmul %4, %1, %cst_5 {dimension_numbers = #tpu.dot_dimension_numbers<[1], [0], [0], [1], [0, 0, 1, 1], [], []>} : vector<8x4xf32>, vector<4x128xf32>, vector<8x128xf32> -> vector<8x128xf32>
    %c0_6 = arith.constant 0 : index
    %c0_7 = arith.constant 0 : index
    %c0_8 = arith.constant 0 : index
    %6 = vector.load %arg2[%c0_6, %c0_7, %c0_8] : memref<3x128x128xf32, #tpu.memory_space<vmem>>, vector<1x128x128xf32>
    %7 = vector.shape_cast %6 : vector<1x128x128xf32> to vector<128x128xf32>
    %cst_9 = arith.constant dense<0.000000e+00> : vector<8x128xf32>
    %8 = tpu.matmul %5, %7, %cst_9 {dimension_numbers = #tpu.dot_dimension_numbers<[1], [0], [0], [1], [0, 0, 1, 1], [], []>} : vector<8x128xf32>, vector<128x128xf32>, vector<8x128xf32> -> vector<8x128xf32>
    %9 = arith.addf %2, %8 : vector<8x128xf32>
    %c1 = arith.constant 1 : index
    %c0_10 = arith.constant 0 : index
    %c0_11 = arith.constant 0 : index
    %10 = vector.load %arg1[%c1, %c0_10, %c0_11] : memref<3x8x4xf32, #tpu.memory_space<vmem>>, vector<1x8x4xf32>
    %11 = vector.shape_cast %10 : vector<1x8x4xf32> to vector<8x4xf32>
    %cst_12 = arith.constant dense<0.000000e+00> : vector<8x128xf32>
    %12 = tpu.matmul %11, %1, %cst_12 {dimension_numbers = #tpu.dot_dimension_numbers<[1], [0], [0], [1], [0, 0, 1, 1], [], []>} : vector<8x4xf32>, vector<4x128xf32>, vector<8x128xf32> -> vector<8x128xf32>
    %c1_13 = arith.constant 1 : index
    %c0_14 = arith.constant 0 : index
    %c0_15 = arith.constant 0 : index
    %13 = vector.load %arg2[%c1_13, %c0_14, %c0_15] : memref<3x128x128xf32, #tpu.memory_space<vmem>>, vector<1x128x128xf32>
    %14 = vector.shape_cast %13 : vector<1x128x128xf32> to vector<128x128xf32>
    %cst_16 = arith.constant dense<0.000000e+00> : vector<8x128xf32>
    %15 = tpu.matmul %12, %14, %cst_16 {dimension_numbers = #tpu.dot_dimension_numbers<[1], [0], [0], [1], [0, 0, 1, 1], [], []>} : vector<8x128xf32>, vector<128x128xf32>, vector<8x128xf32> -> vector<8x128xf32>
    %16 = arith.addf %9, %15 : vector<8x128xf32>
    %c2 = arith.constant 2 : index
    %c0_17 = arith.constant 0 : index
    %c0_18 = arith.constant 0 : index
    %17 = vector.load %arg1[%c2, %c0_17, %c0_18] : memref<3x8x4xf32, #tpu.memory_space<vmem>>, vector<1x8x4xf32>
    %18 = vector.shape_cast %17 : vector<1x8x4xf32> to vector<8x4xf32>
    %cst_19 = arith.constant dense<0.000000e+00> : vector<8x128xf32>
    %19 = tpu.matmul %18, %1, %cst_19 {dimension_numbers = #tpu.dot_dimension_numbers<[1], [0], [0], [1], [0, 0, 1, 1], [], []>} : vector<8x4xf32>, vector<4x128xf32>, vector<8x128xf32> -> vector<8x128xf32>
    %c2_20 = arith.constant 2 : index
    %c0_21 = arith.constant 0 : index
    %c0_22 = arith.constant 0 : index
    %20 = vector.load %arg2[%c2_20, %c0_21, %c0_22] : memref<3x128x128xf32, #tpu.memory_space<vmem>>, vector<1x128x128xf32>
    %21 = vector.shape_cast %20 : vector<1x128x128xf32> to vector<128x128xf32>
    %cst_23 = arith.constant dense<0.000000e+00> : vector<8x128xf32>
    %22 = tpu.matmul %19, %21, %cst_23 {dimension_numbers = #tpu.dot_dimension_numbers<[1], [0], [0], [1], [0, 0, 1, 1], [], []>} : vector<8x128xf32>, vector<128x128xf32>, vector<8x128xf32> -> vector<8x128xf32>
    %23 = arith.addf %16, %22 : vector<8x128xf32>
    %c0_24 = arith.constant 0 : index
    %c0_25 = arith.constant 0 : index
    %c0_26 = arith.constant 0 : index
    %24 = vector.load %arg3[%c0_24, %c0_25, %c0_26] : memref<2x8x128xf32, #tpu.memory_space<vmem>>, vector<1x8x128xf32>
    %25 = vector.shape_cast %24 : vector<1x8x128xf32> to vector<8x128xf32>
    %26 = vector.shape_cast %23 : vector<8x128xf32> to vector<1x8x128xf32>
    tpu.vector_store %arg3[%c0_24, %c0_25, %c0_26], %26 {strides = array<i32>} : memref<2x8x128xf32, #tpu.memory_space<vmem>>, vector<1x8x128xf32>,
    %c1_27 = arith.constant 1 : index
    %c0_28 = arith.constant 0 : index
    %c0_29 = arith.constant 0 : index
    %27 = vector.load %arg0[%c1_27, %c0_28, %c0_29] : memref<2x4x128xf32, #tpu.memory_space<vmem>>, vector<1x4x128xf32>
    %28 = vector.shape_cast %27 : vector<1x4x128xf32> to vector<4x128xf32>
    %cst_30 = arith.constant 0.000000e+00 : f32
    %29 = vector.broadcast %cst_30 : f32 to vector<8x128xf32>
    %c0_31 = arith.constant 0 : index
    %c0_32 = arith.constant 0 : index
    %c0_33 = arith.constant 0 : index
    %30 = vector.load %arg1[%c0_31, %c0_32, %c0_33] : memref<3x8x4xf32, #tpu.memory_space<vmem>>, vector<1x8x4xf32>
    %31 = vector.shape_cast %30 : vector<1x8x4xf32> to vector<8x4xf32>
    %cst_34 = arith.constant dense<0.000000e+00> : vector<8x128xf32>
    %32 = tpu.matmul %31, %28, %cst_34 {dimension_numbers = #tpu.dot_dimension_numbers<[1], [0], [0], [1], [0, 0, 1, 1], [], []>} : vector<8x4xf32>, vector<4x128xf32>, vector<8x128xf32> -> vector<8x128xf32>
    %c0_35 = arith.constant 0 : index
    %c0_36 = arith.constant 0 : index
    %c0_37 = arith.constant 0 : index
    %33 = vector.load %arg2[%c0_35, %c0_36, %c0_37] : memref<3x128x128xf32, #tpu.memory_space<vmem>>, vector<1x128x128xf32>
    %34 = vector.shape_cast %33 : vector<1x128x128xf32> to vector<128x128xf32>
    %cst_38 = arith.constant dense<0.000000e+00> : vector<8x128xf32>
    %35 = tpu.matmul %32, %34, %cst_38 {dimension_numbers = #tpu.dot_dimension_numbers<[1], [0], [0], [1], [0, 0, 1, 1], [], []>} : vector<8x128xf32>, vector<128x128xf32>, vector<8x128xf32> -> vector<8x128xf32>
    %36 = arith.addf %29, %35 : vector<8x128xf32>
    %c1_39 = arith.constant 1 : index
    %c0_40 = arith.constant 0 : index
    %c0_41 = arith.constant 0 : index
    %37 = vector.load %arg1[%c1_39, %c0_40, %c0_41] : memref<3x8x4xf32, #tpu.memory_space<vmem>>, vector<1x8x4xf32>
    %38 = vector.shape_cast %37 : vector<1x8x4xf32> to vector<8x4xf32>
    %cst_42 = arith.constant dense<0.000000e+00> : vector<8x128xf32>
    %39 = tpu.matmul %38, %28, %cst_42 {dimension_numbers = #tpu.dot_dimension_numbers<[1], [0], [0], [1], [0, 0, 1, 1], [], []>} : vector<8x4xf32>, vector<4x128xf32>, vector<8x128xf32> -> vector<8x128xf32>
    %c1_43 = arith.constant 1 : index
    %c0_44 = arith.constant 0 : index
    %c0_45 = arith.constant 0 : index
    %40 = vector.load %arg2[%c1_43, %c0_44, %c0_45] : memref<3x128x128xf32, #tpu.memory_space<vmem>>, vector<1x128x128xf32>
    %41 = vector.shape_cast %40 : vector<1x128x128xf32> to vector<128x128xf32>
    %cst_46 = arith.constant dense<0.000000e+00> : vector<8x128xf32>
    %42 = tpu.matmul %39, %41, %cst_46 {dimension_numbers = #tpu.dot_dimension_numbers<[1], [0], [0], [1], [0, 0, 1, 1], [], []>} : vector<8x128xf32>, vector<128x128xf32>, vector<8x128xf32> -> vector<8x128xf32>
    %43 = arith.addf %36, %42 : vector<8x128xf32>
    %c2_47 = arith.constant 2 : index
    %c0_48 = arith.constant 0 : index
    %c0_49 = arith.constant 0 : index
    %44 = vector.load %arg1[%c2_47, %c0_48, %c0_49] : memref<3x8x4xf32, #tpu.memory_space<vmem>>, vector<1x8x4xf32>
    %45 = vector.shape_cast %44 : vector<1x8x4xf32> to vector<8x4xf32>
    %cst_50 = arith.constant dense<0.000000e+00> : vector<8x128xf32>
    %46 = tpu.matmul %45, %28, %cst_50 {dimension_numbers = #tpu.dot_dimension_numbers<[1], [0], [0], [1], [0, 0, 1, 1], [], []>} : vector<8x4xf32>, vector<4x128xf32>, vector<8x128xf32> -> vector<8x128xf32>
    %c2_51 = arith.constant 2 : index
    %c0_52 = arith.constant 0 : index
    %c0_53 = arith.constant 0 : index
    %47 = vector.load %arg2[%c2_51, %c0_52, %c0_53] : memref<3x128x128xf32, #tpu.memory_space<vmem>>, vector<1x128x128xf32>
    %48 = vector.shape_cast %47 : vector<1x128x128xf32> to vector<128x128xf32>
    %cst_54 = arith.constant dense<0.000000e+00> : vector<8x128xf32>
    %49 = tpu.matmul %46, %48, %cst_54 {dimension_numbers = #tpu.dot_dimension_numbers<[1], [0], [0], [1], [0, 0, 1, 1], [], []>} : vector<8x128xf32>, vector<128x128xf32>, vector<8x128xf32> -> vector<8x128xf32>
    %50 = arith.addf %43, %49 : vector<8x128xf32>
    %c1_55 = arith.constant 1 : index
    %c0_56 = arith.constant 0 : index
    %c0_57 = arith.constant 0 : index
    %51 = vector.load %arg3[%c1_55, %c0_56, %c0_57] : memref<2x8x128xf32, #tpu.memory_space<vmem>>, vector<1x8x128xf32>
    %52 = vector.shape_cast %51 : vector<1x8x128xf32> to vector<8x128xf32>
    %53 = vector.shape_cast %50 : vector<8x128xf32> to vector<1x8x128xf32>
    tpu.vector_store %arg3[%c1_55, %c0_56, %c0_57], %53 {strides = array<i32>} : memref<2x8x128xf32, #tpu.memory_space<vmem>>, vector<1x8x128xf32>,
    return
  }
}

</mosaic_0001>

<bundles_post_ra>
// kernel: dihedral_group_conv_forward.1
= control target key start
LH: loop header
LB: loop body
LE: loop exit
PB: predicated region body
PF: predicated region fallthrough
CT: control target
= control target key end

     0   :  { %8 = vsyncpa [#allocation3], 0  ;;  %s1567_s12 = smov [#allocation2]   ;;  %s1732_s0 = inlined_call_operand.vmem [shape: f32[2,4,128], index: 0, kind: input, shape index: {}]   ;;  %s1733_s1 = inlined_call_operand.vmem [shape: f32[3,8,4], index: 1, kind: input, shape index: {}]   ;;  %s1734_s2 = inlined_call_operand.hbm [shape: f32[3,128,128], index: 2, kind: input, shape index: {}]   ;;  %s1735_s3 = inlined_call_operand.vmem [shape: f32[2,8,128], index: 3, kind: output, shape index: {}]  }
   0x1   :  { %s18_s13 = sshll.u32 %s1567_s12, 4  ;;  %s1543_s16 = scalar_lea.hbm %s1734_s2, 6144  ;;  %s19_s13 = int_to_ptr.vmem [resolvable:$true] %s18_s13 }
   0x2   :  { %p1544_p0 = scmp.ne.s32.totalorder %s1734_s2, %s1543_s16  ;;  %p1547_p1 = scmp.lt.u32.totalorder %s1543_s16, %s1734_s2 }
   0x4   :  { %p1549_p2 = pnand %p1547_p1, %p1544_p0 }
   0x6   :  { %1552 = shalt.err (!%p1549_p2)
}
   0x7   :  { %s1553_s21 = scalar_lea.vmem %s19_s13, 6144  ;;  %p1558_p4 = scmp.lt.s32.totalorder %s19_s13, %s19_s13 }
   0x8   :  { %p1554_p3 = scmp.ne.s32.totalorder %s19_s13, %s1553_s21  ;;  %p1559_p5 = scmp.lt.s32.totalorder %s1553_s21, %s1553_s21 }
   0xa   :  { %p1560_p6 = por %p1559_p5, %p1558_p4 }
   0xc   :  { %p1561_p7 = pnand %p1560_p6, %p1554_p3 }
   0xe   :  { %1564 = shalt.err (!%p1561_p7)
}
   0xf   :  { %s1568_s22 = smov 128   ;;  %s1569_s23 = smov 8  }
  0x10   :  { %24 = dma.hbm_to_vmem [thread:$0]  %s1734_s2, 6144, %s19_s13, [#allocation3], %s1568_s22, %s1568_s22, %s1569_s23  }
  0x11   :  { %1565 = dma.done.wait [#allocation3], 6144  }
  0x12   :  { %1566 = vsyncadd [#allocation3], 4294961152  ;;  %v1570_v0 = vmov 0.0   ;;  %vm1571_vm0 = vmmov 0   ;;  %vm34_vm1 = vcmask 1043456   ;;  %vm30_vm2 = vcmask 31744  }
  0x13   :  { %1145 = vmatprep.subr.mxu0 %v1570_v0  ;;  %1265 = vmatprep.subr.mxu1 %v1570_v0  ;;  %v1614_v1 = vld [vmem:[%s1732_s0] sm:$0xf]  ;;  %v1619_v2 = vld [vmem:[%s1732_s0 + $0x4] sm:$0xf]  ;;  %v201_v5 = vld [vmem:[#allocation2 + $0x88] sm:$0xff]  ;;  %v1572_v10 = vmov 0.0|0.0  }
  0x14   :  { %1147 = vmatprep.mubr.msk.f32.mxu0 %vm1571_vm0, %v1570_v0  ;;  %1267 = vmatprep.mubr.msk.f32.mxu1 %vm1571_vm0, %v1570_v0  ;;  %v29_v3 = vld [vmem:[%s1733_s1] sm:$0xff]  ;;  %v1015_v6 = vld [vmem:[%s1733_s1 + $0x8] sm:$0xff]  ;;  %v202_v8 = vld [vmem:[#allocation2 + $0x90] sm:$0xff] }
  0x15   :  { %1146 = vmatpush3.msk.msra.mxu0 %vm34_vm1, %v1614_v1  ;;  %1266 = vmatpush3.msk.msra.mxu1 %vm34_vm1, %v1619_v2  ;;  %v200_v4 = vld [vmem:[#allocation2 + $0x80] sm:$0xff]  ;;  %v203_v9 = vld [vmem:[#allocation2 + $0x98] sm:$0xff]  ;;  %v205_v13 = vld [vmem:[#allocation2 + $0xa8] sm:$0xff] }
  0x16   :  { %1148 = vmatmul.mubr.msk.f32.vlgmr.msra.gmra.mrb[0].mxu0 %vm30_vm2, %v29_v3  ;;  %1150 = vmatprep.subr.mxu0 %v1570_v0  ;;  %v1386_v7 = vpack.c.bf16 %v201_v5, %v200_v4  ;;  %v1389_v11 = vpack.c.bf16 %v203_v9, %v202_v8  ;;  %v204_v12 = vld [vmem:[#allocation2 + $0xa0] sm:$0xff]  ;;  %v206_v15 = vld [vmem:[#allocation2 + $0xb0] sm:$0xff]  ;;  %v207_v16 = vld [vmem:[#allocation2 + $0xb8] sm:$0xff] }
  0x17   :  { %1268 = vmatmul.mubr.msk.f32.vlgmr.msra.gmra.mrb[0].mxu1 %vm30_vm2, %v29_v3  ;;  %1270 = vmatprep.subr.mxu1 %v1570_v0  ;;  %v1392_v14 = vpack.c.bf16 %v205_v13, %v204_v12  ;;  %v1395_v17 = vpack.c.bf16 %v207_v16, %v206_v15  ;;  %v208_v18 = vld [vmem:[#allocation2 + $0xc0] sm:$0xff]  ;;  %v209_v19 = vld [vmem:[#allocation2 + $0xc8] sm:$0xff]  ;;  %v210_v21 = vld [vmem:[#allocation2 + $0xd0] sm:$0xff] }
  0x18   :  { %1151 = vmatpush3.msk.msra.mxu0 %vm34_vm1, %v1614_v1  ;;  %1271 = vmatpush3.msk.msra.mxu1 %vm34_vm1, %v1619_v2  ;;  %v1398_v20 = vpack.c.bf16 %v209_v19, %v208_v18  ;;  %v211_v22 = vld [vmem:[#allocation2 + $0xd8] sm:$0xff]  ;;  %v212_v24 = vld [vmem:[#allocation2 + $0xe0] sm:$0xff]  ;;  %v213_v25 = vld [vmem:[#allocation2 + $0xe8] sm:$0xff] }
  0x19   :  { %1152 = vmatprep.mubr.msk.f32.mxu0 %vm1571_vm0, %v1570_v0  ;;  %1272 = vmatprep.mubr.msk.f32.mxu1 %vm1571_vm0, %v1570_v0  ;;  %v1401_v23 = vpack.c.bf16 %v211_v22, %v210_v21  ;;  %v1404_v26 = vpack.c.bf16 %v213_v25, %v212_v24  ;;  %v214_v27 = vld [vmem:[#allocation2 + $0xf0] sm:$0xff]  ;;  %v215_v28 = vld [vmem:[#allocation2 + $0xf8] sm:$0xff]  ;;  %v108_v30 = vld [vmem:[#allocation2] sm:$0xff] }
  0x1a   :  { %1153 = vmatmul.mubr.msk.f32.vlgmr.msra.gmra.mrb[2].mxu0 %vm30_vm2, %v1015_v6  ;;  %1385 = vmatprep.subr.bf16.mxu0 %v1572_v10  ;;  %v1407_v29 = vpack.c.bf16 %v215_v28, %v214_v27  ;;  %v109_v31 = vld [vmem:[#allocation2 + $0x8] sm:$0xff]  ;;  %v110_v37 = vld [vmem:[#allocation2 + $0x10] sm:$0xff]  ;;  %v111_v38 = vld [vmem:[#allocation2 + $0x18] sm:$0xff] }
  0x1b   :  { %1273 = vmatmul.mubr.msk.f32.vlgmr.msra.gmra.mrb[2].mxu1 %vm30_vm2, %v1015_v6  ;;  %1457 = vmatprep.subr.bf16.mxu1 %v1572_v10  ;;  %v1410_v36 = vpack.c.bf16 %v109_v31, %v108_v30  ;;  %v1413_v43 = vpack.c.bf16 %v111_v38, %v110_v37  ;;  %v112_v44 = vld [vmem:[#allocation2 + $0x20] sm:$0xff]  ;;  %v113_v45 = vld [vmem:[#allocation2 + $0x28] sm:$0xff]  ;;  %v114_v47 = vld [vmem:[#allocation2 + $0x30] sm:$0xff] }
  0x1c   :  { %1387 = vmatpush3.bf16.msra.mxu0 %v1386_v7  ;;  %1459 = vmatpush3.bf16.msra.mxu1 %v1386_v7  ;;  %v1416_v46 = vpack.c.bf16 %v113_v45, %v112_v44  ;;  %v115_v48 = vld [vmem:[#allocation2 + $0x38] sm:$0xff]  ;;  %v116_v50 = vld [vmem:[#allocation2 + $0x40] sm:$0xff]  ;;  %v117_v51 = vld [vmem:[#allocation2 + $0x48] sm:$0xff] }
  0x1d   :  { %1388 = vmatprep.subr.bf16.mxu0 %v1572_v10  ;;  %1460 = vmatprep.subr.bf16.mxu1 %v1572_v10  ;;  %v1419_v49 = vpack.c.bf16 %v115_v48, %v114_v47  ;;  %v1422_v52 = vpack.c.bf16 %v117_v51, %v116_v50  ;;  %v118_v53 = vld [vmem:[#allocation2 + $0x50] sm:$0xff]  ;;  %v119_v54 = vld [vmem:[#allocation2 + $0x58] sm:$0xff]  ;;  %v120_v56 = vld [vmem:[#allocation2 + $0x60] sm:$0xff] }
  0x1e   :  { %1187 = vmatprep.mubr.msk.f32.mxu0 %vm1571_vm0, %v1570_v0  ;;  %1307 = vmatprep.mubr.msk.f32.mxu1 %vm1571_vm0, %v1570_v0  ;;  %v1425_v55 = vpack.c.bf16 %v119_v54, %v118_v53  ;;  %v121_v57 = vld [vmem:[#allocation2 + $0x68] sm:$0xff]  ;;  %v122_v59 = vld [vmem:[#allocation2 + $0x70] sm:$0xff]  ;;  %v123_v60 = vld [vmem:[#allocation2 + $0x78] sm:$0xff] }
  0x1f   :  { %v1428_v58 = vpack.c.bf16 %v121_v57, %v120_v56  ;;  %v1431_v61 = vpack.c.bf16 %v123_v60, %v122_v59  ;;  %v432_v62 = vld [vmem:[#allocation2 + $0x100] sm:$0xff]  ;;  %v433_v63 = vld [vmem:[#allocation2 + $0x108] sm:$0xff]  ;;  %v1018_v3 = vld [vmem:[%s1733_s1 + $0x10] sm:$0xff] }
  0x20   :  { %1390 = vmatpush3.bf16.msra.mxu0 %v1389_v11  ;;  %1462 = vmatpush3.bf16.msra.mxu1 %v1389_v11  ;;  %v1434_v4 = vpack.c.bf16 %v433_v63, %v432_v62  ;;  %v434_v5 = vld [vmem:[#allocation2 + $0x110] sm:$0xff]  ;;  %v435_v6 = vld [vmem:[#allocation2 + $0x118] sm:$0xff]  ;;  %v437_v7 = vld [vmem:[#allocation2 + $0x128] sm:$0xff] }
  0x21   :  { %1391 = vmatprep.subr.bf16.mxu0 %v1572_v10  ;;  %1463 = vmatprep.subr.bf16.mxu1 %v1572_v10  ;;  %v438_v9 = vld [vmem:[#allocation2 + $0x130] sm:$0xff]  ;;  %v439_v11 = vld [vmem:[#allocation2 + $0x138] sm:$0xff]  ;;  %v440_v13 = vld [vmem:[#allocation2 + $0x140] sm:$0xff] }
  0x22   :  { %v1443_v12 = vpack.c.bf16 %v439_v11, %v438_v9  ;;  %v442_v15 = vld [vmem:[#allocation2 + $0x150] sm:$0xff]  ;;  %v443_v16 = vld [vmem:[#allocation2 + $0x158] sm:$0xff]  ;;  %v444_v18 = vld [vmem:[#allocation2 + $0x160] sm:$0xff] }
  0x23   :  { %v445_v19 = vld [vmem:[#allocation2 + $0x168] sm:$0xff]  ;;  %v446_v21 = vld [vmem:[#allocation2 + $0x170] sm:$0xff]  ;;  %v447_v22 = vld [vmem:[#allocation2 + $0x178] sm:$0xff] }
  0x24   :  { %1393 = vmatpush3.bf16.msra.mxu0 %v1392_v14  ;;  %1465 = vmatpush3.bf16.msra.mxu1 %v1392_v14  ;;  %v441_v14 = vld [vmem:[#allocation2 + $0x148] sm:$0xff] }
  0x25   :  { %1394 = vmatprep.subr.bf16.mxu0 %v1572_v10  ;;  %1466 = vmatprep.subr.bf16.mxu1 %v1572_v10 }
  0x28   :  { %1396 = vmatpush3.bf16.msra.mxu0 %v1395_v17  ;;  %1468 = vmatpush3.bf16.msra.mxu1 %v1395_v17  ;;  %v1449_v17 = vpack.c.bf16 %v443_v16, %v442_v15 }
  0x29   :  { %1397 = vmatprep.subr.bf16.mxu0 %v1572_v10  ;;  %1469 = vmatprep.subr.bf16.mxu1 %v1572_v10 }
  0x2c   :  { %1399 = vmatpush3.bf16.msra.mxu0 %v1398_v20  ;;  %1471 = vmatpush3.bf16.msra.mxu1 %v1398_v20  ;;  %v1452_v20 = vpack.c.bf16 %v445_v19, %v444_v18 }
  0x2d   :  { %1400 = vmatprep.subr.bf16.mxu0 %v1572_v10  ;;  %1472 = vmatprep.subr.bf16.mxu1 %v1572_v10 }
  0x30   :  { %1402 = vmatpush3.bf16.msra.mxu0 %v1401_v23  ;;  %1474 = vmatpush3.bf16.msra.mxu1 %v1401_v23  ;;  %v1455_v23 = vpack.c.bf16 %v447_v22, %v446_v21 }
  0x31   :  { %1403 = vmatprep.subr.bf16.mxu0 %v1572_v10  ;;  %1475 = vmatprep.subr.bf16.mxu1 %v1572_v10 }
  0x34   :  { %1405 = vmatpush3.bf16.msra.mxu0 %v1404_v26  ;;  %1477 = vmatpush3.bf16.msra.mxu1 %v1404_v26 }
  0x35   :  { %1406 = vmatprep.subr.bf16.mxu0 %v1572_v10  ;;  %1478 = vmatprep.subr.bf16.mxu1 %v1572_v10 }
  0x38   :  { %1408 = vmatpush3.bf16.msra.mxu0 %v1407_v29  ;;  %1480 = vmatpush3.bf16.msra.mxu1 %v1407_v29 }
  0x39   :  { %1409 = vmatprep.subr.bf16.mxu0 %v1572_v10  ;;  %1481 = vmatprep.subr.bf16.mxu1 %v1572_v10 }
  0xe9   :  { %v1667_v32 = vpop.f32.mrb[0].mxu0 }
  0xea   :  { %v1669_v33 = vpop.f32.mrb[0].mxu1  ;;  %v1149_v34 = vpop.f32.mrb[1].mxu0 }
  0xeb   :  { %v1269_v35 = vpop.f32.mrb[1].mxu1 }
  0xed   :  { %v195_v39 = vpop.f32.mrb[2].mxu0 }
  0xee   :  { %v685_v40 = vpop.f32.mrb[2].mxu1  ;;  %v1154_v41 = vpop.f32.mrb[3].mxu0  ;;  %1188 = vmatmul.mubr.f32.vlgmr.msra.gmra.mrb[4].mxu0 %v195_v39 }
  0xef   :  { %1411 = vmatpush3.bf16.msra.mxu0 %v1410_v36  ;;  %v1274_v42 = vpop.f32.mrb[3].mxu1  ;;  %1308 = vmatmul.mubr.f32.vlgmr.msra.gmra.mrb[4].mxu1 %v685_v40 }
  0xf0   :  { %1483 = vmatpush3.bf16.msra.mxu1 %v1410_v36  ;;  %1412 = vmatprep.subr.bf16.mxu0 %v1572_v10 }
  0xf1   :  { %1484 = vmatprep.subr.bf16.mxu1 %v1572_v10  ;;  %1222 = vmatprep.mubr.msk.f32.mxu0 %vm1571_vm0, %v1570_v0 }
  0xf2   :  { %1342 = vmatprep.mubr.msk.f32.mxu1 %vm1571_vm0, %v1570_v0 }
  0xf3   :  { %1414 = vmatpush3.bf16.msra.mxu0 %v1413_v43 }
  0xf4   :  { %1486 = vmatpush3.bf16.msra.mxu1 %v1413_v43  ;;  %1415 = vmatprep.subr.bf16.mxu0 %v1572_v10 }
  0xf5   :  { %1487 = vmatprep.subr.bf16.mxu1 %v1572_v10 }
  0xf7   :  { %1417 = vmatpush3.bf16.msra.mxu0 %v1416_v46 }
  0xf8   :  { %1489 = vmatpush3.bf16.msra.mxu1 %v1416_v46  ;;  %1418 = vmatprep.subr.bf16.mxu0 %v1572_v10 }
  0xf9   :  { %1490 = vmatprep.subr.bf16.mxu1 %v1572_v10 }
  0xfb   :  { %1420 = vmatpush3.bf16.msra.mxu0 %v1419_v49 }
  0xfc   :  { %1492 = vmatpush3.bf16.msra.mxu1 %v1419_v49  ;;  %1421 = vmatprep.subr.bf16.mxu0 %v1572_v10 }
  0xfd   :  { %1493 = vmatprep.subr.bf16.mxu1 %v1572_v10 }
  0xff   :  { %1423 = vmatpush3.bf16.msra.mxu0 %v1422_v52 }
 0x100   :  { %1495 = vmatpush3.bf16.msra.mxu1 %v1422_v52  ;;  %1424 = vmatprep.subr.bf16.mxu0 %v1572_v10 }
 0x101   :  { %1496 = vmatprep.subr.bf16.mxu1 %v1572_v10 }
 0x103   :  { %1426 = vmatpush3.bf16.msra.mxu0 %v1425_v55 }
 0x104   :  { %1498 = vmatpush3.bf16.msra.mxu1 %v1425_v55  ;;  %1427 = vmatprep.subr.bf16.mxu0 %v1572_v10 }
 0x105   :  { %1499 = vmatprep.subr.bf16.mxu1 %v1572_v10 }
 0x107   :  { %1429 = vmatpush3.bf16.msra.mxu0 %v1428_v58 }
 0x108   :  { %1501 = vmatpush3.bf16.msra.mxu1 %v1428_v58  ;;  %1430 = vmatprep.subr.bf16.mxu0 %v1572_v10 }
 0x109   :  { %1502 = vmatprep.subr.bf16.mxu1 %v1572_v10 }
 0x10b   :  { %1432 = vmatpush3.bf16.msra.mxu0 %v1431_v61 }
 0x10c   :  { %1504 = vmatpush3.bf16.msra.mxu1 %v1431_v61  ;;  %1225 = vmatprep.subr.mxu0 %v1570_v0 }
 0x10d   :  { %1345 = vmatprep.subr.mxu1 %v1570_v0 }
 0x10e   :  { %1223 = vmatmul.mubr.f32.vlgmr.msra.gmra.mrb[4].mxu0 %v1667_v32 }
 0x10f   :  { %1343 = vmatmul.mubr.f32.vlgmr.msra.gmra.mrb[4].mxu1 %v1669_v33  ;;  %1226 = vmatpush3.msk.msra.mxu0 %vm34_vm1, %v1614_v1  ;;  %v1437_v1 = vpack.c.bf16 %v435_v6, %v434_v5 }
 0x110   :  { %1346 = vmatpush3.msk.msra.mxu1 %vm34_vm1, %v1619_v2  ;;  %1227 = vmatprep.mubr.msk.f32.mxu0 %vm1571_vm0, %v1570_v0  ;;  %v436_v2 = vld [vmem:[#allocation2 + $0x120] sm:$0xff] }
 0x111   :  { %1347 = vmatprep.mubr.msk.f32.mxu1 %vm1571_vm0, %v1570_v0  ;;  %1433 = vmatprep.subr.bf16.mxu0 %v1572_v10  ;;  %v1440_v8 = vpack.c.bf16 %v437_v7, %v436_v2 }
 0x112   :  { %1228 = vmatmul.mubr.msk.f32.vlgmr.msra.gmra.mrb[6].mxu0 %vm30_vm2, %v1018_v3  ;;  %1505 = vmatprep.subr.bf16.mxu1 %v1572_v10 }
 0x113   :  { %1348 = vmatmul.mubr.msk.f32.vlgmr.msra.gmra.mrb[6].mxu1 %vm30_vm2, %v1018_v3  ;;  %1435 = vmatpush3.bf16.msra.mxu0 %v1434_v4 }
 0x114   :  { %1507 = vmatpush3.bf16.msra.mxu1 %v1434_v4  ;;  %1436 = vmatprep.subr.bf16.mxu0 %v1572_v10 }
 0x115   :  { %1508 = vmatprep.subr.bf16.mxu1 %v1572_v10  ;;  %1262 = vmatprep.mubr.msk.f32.mxu0 %vm1571_vm0, %v1570_v0 }
 0x116   :  { %1382 = vmatprep.mubr.msk.f32.mxu1 %vm1571_vm0, %v1570_v0  ;;  %v1446_v0 = vpack.c.bf16 %v441_v14, %v440_v13 }
 0x117   :  { %1438 = vmatpush3.bf16.msra.mxu0 %v1437_v1 }
 0x118   :  { %1510 = vmatpush3.bf16.msra.mxu1 %v1437_v1  ;;  %1439 = vmatprep.subr.bf16.mxu0 %v1572_v10 }
 0x119   :  { %1511 = vmatprep.subr.bf16.mxu1 %v1572_v10 }
 0x11b   :  { %1441 = vmatpush3.bf16.msra.mxu0 %v1440_v8 }
 0x11c   :  { %1513 = vmatpush3.bf16.msra.mxu1 %v1440_v8  ;;  %1442 = vmatprep.subr.bf16.mxu0 %v1572_v10 }
 0x11d   :  { %1514 = vmatprep.subr.bf16.mxu1 %v1572_v10 }
 0x11f   :  { %1444 = vmatpush3.bf16.msra.mxu0 %v1443_v12 }
 0x120   :  { %1516 = vmatpush3.bf16.msra.mxu1 %v1443_v12  ;;  %1445 = vmatprep.subr.bf16.mxu0 %v1572_v10 }
 0x121   :  { %1517 = vmatprep.subr.bf16.mxu1 %v1572_v10 }
 0x123   :  { %1447 = vmatpush3.bf16.msra.mxu0 %v1446_v0 }
 0x124   :  { %1519 = vmatpush3.bf16.msra.mxu1 %v1446_v0  ;;  %1448 = vmatprep.subr.bf16.mxu0 %v1572_v10 }
 0x125   :  { %1520 = vmatprep.subr.bf16.mxu1 %v1572_v10 }
 0x127   :  { %1450 = vmatpush3.bf16.msra.mxu0 %v1449_v17 }
 0x128   :  { %1522 = vmatpush3.bf16.msra.mxu1 %v1449_v17  ;;  %1451 = vmatprep.subr.bf16.mxu0 %v1572_v10 }
 0x129   :  { %1523 = vmatprep.subr.bf16.mxu1 %v1572_v10 }
 0x12b   :  { %1453 = vmatpush3.bf16.msra.mxu0 %v1452_v20 }
 0x12c   :  { %1525 = vmatpush3.bf16.msra.mxu1 %v1452_v20  ;;  %1454 = vmatprep.subr.bf16.mxu0 %v1572_v10 }
 0x12d   :  { %1526 = vmatprep.subr.bf16.mxu1 %v1572_v10 }
 0x12f   :  { %1456 = vmatpush3.bf16.msra.mxu0 %v1455_v23 }
 0x130   :  { %1528 = vmatpush3.bf16.msra.mxu1 %v1455_v23 }
 0x1e5   :  { %v427_v24 = vpop.f32.mrb[6].mxu0 }
 0x1e6   :  { %v915_v25 = vpop.f32.mrb[6].mxu1  ;;  %v1229_v26 = vpop.f32.mrb[7].mxu0  ;;  %1263 = vmatmul.mubr.f32.vlgmr.msra.gmra.mrb[4].mxu0 %v427_v24 }
 0x1e7   :  { %v1349_v27 = vpop.f32.mrb[7].mxu1  ;;  %1383 = vmatmul.mubr.f32.vlgmr.msra.gmra.mrb[4].mxu1 %v915_v25 }
 0x2b9   :  { %v514_v28 = vpop.f32.mrb[4].mxu0 }
 0x2ba   :  { %519 = vst [vmem:[%s1735_s3] sm:$0xff] %v514_v28  ;;  %v1001_v29 = vpop.f32.mrb[4].mxu1  ;;  %v1264_v30 = vpop.f32.mrb[5].mxu0 }
 0x2bb   :  { %1030 = vst [vmem:[%s1735_s3 + $0x8] sm:$0xff] %v1001_v29  ;;  %v1384_v10 = vpop.f32.mrb[5].mxu1 }
 0x2bc   :  { %1012 = vsyncpa [#allocation3], 1 }

</bundles_post_ra>
